<compile_context>
chip_gen: v7x
topology: tpu7x:2x2x1
jax: 0.10.0
libtpu: 0.0.40
codegen_flags: <defaults>
</compile_context>

<pallas_src>
import jax
import jax.numpy as jnp
from jax.experimental import pallas as pl
from jax.experimental.pallas import tpu as pltpu


# ----------------------------------------------------------------------------
# Kernel 1: patch encoder proxy (projection + mean pool + L2 normalize).
# TODO(synk): the real embedder runs the full Pix2Struct transformer encoder;
#             only the patch-projection + pooling proxy is kernelized here.
# ----------------------------------------------------------------------------
def embed_kernel(x_ref, w_ref, o_ref):
    # x_ref: (TILE_N, S, D) bf16, w_ref: (D, H) bf16, o_ref: (TILE_N, H) f32
    tn, S, D = x_ref.shape
    H = w_ref.shape[1]
    x2 = x_ref[...].reshape(tn * S, D)                                   # bf16
    proj = jnp.dot(x2, w_ref[...], preferred_element_type=jnp.float32)   # (tn*S, H) f32
    pooled = jnp.mean(proj.reshape(tn, S, H), axis=1)                    # (tn, H) f32
    inv = jax.lax.rsqrt(jnp.sum(pooled * pooled, axis=-1, keepdims=True) + 1e-6)
    o_ref[...] = (pooled * inv).astype(o_ref.dtype)


def embed(x, w, *, rows_per_step=256):
    """x: [N, S, D], w: [D, H] -> [N, H] L2-normalized embeddings (f32).

    Batches TILE_N items per grid step so the MXU M-dim is TILE_N*S
    (>= rows_per_step), instead of one item / S rows per step.
    """
    N, S, D = x.shape
    H = w.shape[1]
    tile_n = max(1, rows_per_step // S)
    n_pad = pl.cdiv(N, tile_n) * tile_n

    xb = x.astype(jnp.bfloat16)
    if n_pad != N:
        # zero-padded items pool to 0 and normalize to 0; dropped after the call
        xb = jnp.pad(xb, ((0, n_pad - N), (0, 0), (0, 0)))

    # NOTE: w is resident (index_map -> (0,0)); at D=H~768 bf16 its 2x
    # double-buffered footprint is ~2.3 MB — acceptable even on v7x's 64 MiB.
    out = pl.pallas_call(
        embed_kernel,
        out_shape=jax.ShapeDtypeStruct((n_pad, H), jnp.float32),
        grid=(n_pad // tile_n,),
        in_specs=[
            pl.BlockSpec((tile_n, S, D), lambda i: (i, 0, 0)),
            pl.BlockSpec((D, H), lambda i: (0, 0)),
        ],
        out_specs=pl.BlockSpec((tile_n, H), lambda i: (i, 0)),
        compiler_params=pltpu.CompilerParams(dimension_semantics=("parallel",)),
    )(xb, w.astype(jnp.bfloat16))
    return out[:N]


# ----------------------------------------------------------------------------
# Kernel 2: generator head proxy — fuse question embedding with retrieved
#           context and project to vocab logits, streaming w_vocab over V.
# TODO(synk): autoregressive generate()/beam search has no tensor-kernel
#             equivalent; a single-step logits head is implemented instead.
# ----------------------------------------------------------------------------
def generate_kernel(q_ref, ctx_ref, w_ref, o_ref):
    # q_ref: (B, H) f32, ctx_ref: (B, H) f32,
    # w_ref: (H, TILE_V) bf16, o_ref: (B, TILE_V) f32
    fused = q_ref[...] * ctx_ref[...] + q_ref[...]          # f32 elementwise (tiny)
    o_ref[...] = jnp.dot(fused.astype(w_ref.dtype), w_ref[...],
                         preferred_element_type=jnp.float32)


def generate_logits(q_emb, ctx, w_vocab, *, tile_v=2048):
    """q_emb, ctx: [B, H] f32; w_vocab: [H, V] -> logits [B, V] f32.

    The head is HBM-bandwidth bound at small B: tile V so the bf16 weight
    streams through a double-buffered BlockSpec pipeline (tile_v sized for
    v7x's 64 MiB VMEM budget as well as v5e/v6e's 128 MiB).
    """
    B, H = q_emb.shape
    V = w_vocab.shape[1]
    tile_v = min(tile_v, V)
    v_pad = pl.cdiv(V, tile_v) * tile_v

    wv = w_vocab.astype(jnp.bfloat16)
    if v_pad != V:
        wv = jnp.pad(wv, ((0, 0), (0, v_pad - V)))

    out = pl.pallas_call(
        generate_kernel,
        out_shape=jax.ShapeDtypeStruct((B, v_pad), jnp.float32),
        grid=(v_pad // tile_v,),
        in_specs=[
            pl.BlockSpec((B, H), lambda j: (0, 0)),
            pl.BlockSpec((B, H), lambda j: (0, 0)),
            pl.BlockSpec((H, tile_v), lambda j: (0, j)),
        ],
        out_specs=pl.BlockSpec((B, tile_v), lambda j: (0, j)),
        compiler_params=pltpu.CompilerParams(dimension_semantics=("parallel",)),
    )(q_emb, ctx, wv)
    return out[:, :V]


# ----------------------------------------------------------------------------
# Full forward (glue in plain JAX: concat, cosine scores, top-k, gather)
# ----------------------------------------------------------------------------
def rag_pix2struct_forward(page_patches, question_feats, w_embed, w_vocab, top_k=2):
    """page_patches: [B, P, S, D], question_feats: [B, S, D]."""
    B, P, S_p, D = page_patches.shape
    S_q = question_feats.shape[1]
    H = w_embed.shape[1]
    assert S_p == S_q, "demo proxy: shared patch-seq length so embeddings fuse"

    # online_retrieve: page-chunk + question embeddings in ONE pallas_call
    # (they share w_embed; fusing removes a launch + HBM round-trip).
    x_all = jnp.concatenate(
        [page_patches.reshape(B * P, S_p, D), question_feats], axis=0)  # (B*P+B, S, D)
    emb_all = embed(x_all, w_embed)                                     # (B*P+B, H)
    page_emb = emb_all[: B * P].reshape(B, P, H)
    q_emb = emb_all[B * P:]                                             # (B, H)

    # retriever: cosine similarity (embeddings already L2-normalized) + top-k.
    # Tiny (B,P,H) mat-vec — kernel launch overhead would dominate, keep in JAX.
    scores = jnp.einsum("bph,bh->bp", page_emb, q_emb)                  # (B, P)
    _, page_indices = jax.lax.top_k(scores, top_k)                      # (B, K)

    # gather retrieved chunk embeddings (data-dependent gather kept in JAX glue)
    sel = jnp.take_along_axis(page_emb, page_indices[..., None], axis=1)  # (B, K, H)
    ctx = jnp.mean(sel, axis=1)                                         # (B, H)

    # generator head
    logits = generate_logits(q_emb, ctx, w_vocab)                       # (B, V)
    pred_tokens = jnp.argmax(logits, axis=-1)                           # (B,)
    return logits, pred_tokens, page_indices


if __name__ == "__main__":
    # Lane-friendly synthetic shapes consistent with the pipeline:
    #   B=2 questions/documents, P=4 page chunks per document,
    #   S=8 patches per chunk / rendered question,
    #   D=128 patch feature dim, H=128 hidden, V=4096 vocab, K=2 retrieved.
    B, P, S, D, H, V, K = 2, 4, 8, 128, 128, 4096, 2

    key = jax.random.PRNGKey(0)
    k1, k2, k3, k4 = jax.random.split(key, 4)
    page_patches = jax.random.normal(k1, (B, P, S, D), dtype=jnp.float32)
    question_feats = jax.random.normal(k2, (B, S, D), dtype=jnp.float32)
    w_embed = 0.05 * jax.random.normal(k3, (D, H), dtype=jnp.float32)
    w_vocab = 0.05 * jax.random.normal(k4, (H, V), dtype=jnp.float32)

    logits, pred_tokens, page_indices = rag_pix2struct_forward(
        page_patches, question_feats, w_embed, w_vocab, top_k=K
    )
    jax.block_until_ready((logits, pred_tokens, page_indices))

    assert logits.shape == (B, V)
    assert pred_tokens.shape == (B,)
    assert page_indices.shape == (B, K)
    assert bool(jnp.all(jnp.isfinite(logits)))
    print("KERNEL_OK")
</pallas_src>

<mosaic_0001>
module attributes {stable_mosaic.version = 11 : i64} {
  func.func @embed_kernel(%arg0: i32, %arg1: memref<32x8x128xbf16, #tpu.memory_space<vmem>>, %arg2: memref<128x128xbf16, #tpu.memory_space<vmem>>, %arg3: memref<32x128xf32, #tpu.memory_space<vmem>>) attributes {dimension_semantics = [#tpu.dimension_semantics<parallel>], iteration_bounds = array<i64: 1>, scalar_prefetch = 0 : i64, scratch_operands = 0 : i64, tpu.core_type = #tpu.core_type<tc>, window_params = [{transform_indices = @transform_0, window_bounds = array<i64: 32, 8, 128>}, {pipeline_mode = #tpu.pipeline_mode<synchronous>, transform_indices = @transform_1, window_bounds = array<i64: 128, 128>}, {transform_indices = @transform_2, window_bounds = array<i64: 32, 128>}]} {
    %c0 = arith.constant 0 : index
    %c0_0 = arith.constant 0 : index
    %c0_1 = arith.constant 0 : index
    %0 = vector.load %arg1[%c0, %c0_0, %c0_1] : memref<32x8x128xbf16, #tpu.memory_space<vmem>>, vector<32x8x128xbf16>
    %1 = vector.shape_cast %0 : vector<32x8x128xbf16> to vector<256x128xbf16>
    %c0_2 = arith.constant 0 : index
    %c0_3 = arith.constant 0 : index
    %2 = vector.load %arg2[%c0_2, %c0_3] : memref<128x128xbf16, #tpu.memory_space<vmem>>, vector<128x128xbf16>
    %cst = arith.constant dense<0.000000e+00> : vector<256x128xf32>
    %3 = tpu.matmul %1, %2, %cst {dimension_numbers = #tpu.dot_dimension_numbers<[1], [0], [0], [1], [0, 0, 1, 1], [], []>} : vector<256x128xbf16>, vector<128x128xbf16>, vector<256x128xf32> -> vector<256x128xf32>
    %4 = vector.shape_cast %3 : vector<256x128xf32> to vector<32x8x128xf32>
    %cst_4 = arith.constant dense<0.000000e+00> : vector<32x128xf32>
    %5 = vector.multi_reduction <add>, %4, %cst_4 [1] : vector<32x8x128xf32> to vector<32x128xf32>
    %cst_5 = arith.constant 8.000000e+00 : f32
    %6 = vector.broadcast %cst_5 : f32 to vector<32x128xf32>
    %7 = arith.divf %5, %6 : vector<32x128xf32>
    %8 = arith.mulf %7, %7 : vector<32x128xf32>
    %cst_6 = arith.constant dense<0.000000e+00> : vector<32xf32>
    %9 = vector.multi_reduction <add>, %8, %cst_6 [1] : vector<32x128xf32> to vector<32xf32>
    %10 = vector.shape_cast %9 : vector<32xf32> to vector<32x1xf32>
    %cst_7 = arith.constant 9.99999997E-7 : f32
    %11 = vector.broadcast %cst_7 : f32 to vector<32x1xf32>
    %12 = arith.addf %10, %11 : vector<32x1xf32>
    %13 = math.rsqrt %12 : vector<32x1xf32>
    %14 = vector.broadcast %13 : vector<32x1xf32> to vector<32x128xf32>
    %15 = arith.mulf %7, %14 : vector<32x128xf32>
    %c0_8 = arith.constant 0 : index
    %c0_9 = arith.constant 0 : index
    %16 = vector.load %arg3[%c0_8, %c0_9] : memref<32x128xf32, #tpu.memory_space<vmem>>, vector<32x128xf32>
    tpu.vector_store %arg3[%c0_8, %c0_9], %15 {strides = array<i32>} : memref<32x128xf32, #tpu.memory_space<vmem>>, vector<32x128xf32>,
    return
  }
  func.func @transform_0(%arg0: i32) -> (i32, i32, i32) {
    %c0_i32 = arith.constant 0 : i32
    %c0_i32_0 = arith.constant 0 : i32
    %c0_i32_1 = arith.constant 0 : i32
    return %arg0, %c0_i32, %c0_i32_0 : i32, i32, i32
  }
  func.func @transform_1(%arg0: i32) -> (i32, i32) {
    %c0_i32 = arith.constant 0 : i32
    %c0_i32_0 = arith.constant 0 : i32
    %c0_i32_1 = arith.constant 0 : i32
    return %c0_i32, %c0_i32_0 : i32, i32
  }
  func.func @transform_2(%arg0: i32) -> (i32, i32) {
    %c0_i32 = arith.constant 0 : i32
    %c0_i32_0 = arith.constant 0 : i32
    return %arg0, %c0_i32 : i32, i32
  }
}

</mosaic_0001>

<bundles_post_ra>
// kernel: tpu_custom_call.1
= control target key start
LH: loop header
LB: loop body
LE: loop exit
PB: predicated region body
PF: predicated region fallthrough
CT: control target
= control target key end

     0   :  { %7 = vsyncpa [#allocation3], 0  ;;  %s1572_s0 = inlined_call_operand.hbm [shape: bf16[32,8,128], index: 0, kind: input, shape index: {}]   ;;  %s1573_s1 = inlined_call_operand.hbm [shape: bf16[128,128], index: 1, kind: input, shape index: {}]   ;;  %s1574_s2 = inlined_call_operand.hbm [shape: f32[32,128], index: 2, kind: output, shape index: {}]  }
   0x1   :  { %8 = vsyncpa [#allocation6], 0 }
   0x2   :  { %9 = vsyncpa [#allocation4], 0  ;;  %s1171_s9 = smov [#allocation2]   ;;  %s1099_s13 = scalar_lea.hbm %s1572_s0, 2048 }
   0x3   :  { %s15_s10 = sshll.u32 %s1171_s9, 4  ;;  %p1100_p0 = scmp.ne.s32.totalorder %s1572_s0, %s1099_s13  ;;  %s16_s10 = int_to_ptr.vmem [resolvable:$true] %s15_s10 }
   0x4   :  { %p1103_p1 = scmp.lt.u32.totalorder %s1099_s13, %s1572_s0 }
   0x6   :  { %p1105_p2 = pnand %p1103_p1, %p1100_p0 }
   0x8   :  { %1108 = shalt.err (!%p1105_p2)
}
   0x9   :  { %s1109_s18 = scalar_lea.vmem %s16_s10, 2048  ;;  %p1114_p4 = scmp.lt.s32.totalorder %s16_s10, %s16_s10 }
   0xa   :  { %p1110_p3 = scmp.ne.s32.totalorder %s16_s10, %s1109_s18  ;;  %p1115_p5 = scmp.lt.s32.totalorder %s1109_s18, %s1109_s18 }
   0xc   :  { %p1116_p6 = por %p1115_p5, %p1114_p4 }
   0xe   :  { %p1117_p7 = pnand %p1116_p6, %p1110_p3 }
  0x10   :  { %1120 = shalt.err (!%p1117_p7)
}
  0x11   :  { %s1172_s19 = smov 64   ;;  %s1173_s20 = smov 4  }
  0x12   :  { %21 = dma.hbm_to_vmem [thread:$0]  %s1572_s0, 2048, %s16_s10, [#allocation3], %s1172_s19, %s1172_s19, %s1173_s20  }
  0x13   :  { %s1174_s23 = smov [#allocation5]   ;;  %s1121_s27 = scalar_lea.hbm %s1573_s1, 1024 }
  0x14   :  { %s27_s24 = sshll.u32 %s1174_s23, 4  ;;  %p1122_p8 = scmp.ne.s32.totalorder %s1573_s1, %s1121_s27  ;;  %s28_s24 = int_to_ptr.vmem [resolvable:$true] %s27_s24 }
  0x15   :  { %p1125_p9 = scmp.lt.u32.totalorder %s1121_s27, %s1573_s1 }
  0x17   :  { %p1127_p10 = pnand %p1125_p9, %p1122_p8 }
  0x19   :  { %1130 = shalt.err (!%p1127_p10)
}
  0x1a   :  { %s1131_s4 = scalar_lea.vmem %s28_s24, 1024  ;;  %p1136_p12 = scmp.lt.s32.totalorder %s28_s24, %s28_s24 }
  0x1b   :  { %p1132_p11 = scmp.ne.s32.totalorder %s28_s24, %s1131_s4  ;;  %p1137_p13 = scmp.lt.s32.totalorder %s1131_s4, %s1131_s4 }
  0x1d   :  { %p1138_p0 = por %p1137_p13, %p1136_p12 }
  0x1f   :  { %p1139_p1 = pnand %p1138_p0, %p1132_p11 }
  0x21   :  { %1142 = shalt.err (!%p1139_p1)
}
  0x22   :  { %33 = dma.hbm_to_vmem [thread:$0]  %s1573_s1, 1024, %s28_s24, [#allocation6], %s1172_s19, %s1172_s19, %s1173_s20  }
  0x23   :  { %1165 = dma.done.wait [#allocation3], 2048  }
  0x24   :  { %1166 = vsyncadd [#allocation3], 4294965248 }
  0x25   :  { %1167 = dma.done.wait [#allocation6], 1024  }
  0x26   :  { %1168 = vsyncadd [#allocation6], 4294966272  ;;  %v1067_v0 = vld [vmem:[#allocation5] sm:$0xff]   ;;  %v1068_v1 = vld [vmem:[#allocation5 + $0x8] sm:$0xff]   ;;  %vm683_vm0 = vcmask 1041409   ;;  %vm685_vm1 = vcmask 1042434  }
  0x27   :  { %996 = vmatprep.subr.bf16.mxu0 %v1067_v0  ;;  %1044 = vmatprep.subr.bf16.mxu1 %v1067_v0  ;;  %v1069_v2 = vld [vmem:[#allocation5 + $0x10] sm:$0xff]   ;;  %v1070_v3 = vld [vmem:[#allocation5 + $0x18] sm:$0xff]   ;;  %v1075_v4 = vld [vmem:[#allocation2] sm:$0xff]   ;;  %vm687_vm2 = vcmask 1043459   ;;  %vm689_vm3 = vcmask 1044484   ;;  %vm691_vm4 = vcmask 1045509  }
  0x28   :  { %997 = vmatpush3.bf16.msra.mxu0 %v1067_v0  ;;  %1052 = vmatpush3.bf16.msra.mxu1 %v1067_v0  ;;  %v1076_v5 = vld [vmem:[#allocation2 + $0x40] sm:$0xff]   ;;  %v1072_v7 = vld [vmem:[#allocation5 + $0x28] sm:$0xff]   ;;  %v1073_v8 = vld [vmem:[#allocation5 + $0x30] sm:$0xff]   ;;  %vm693_vm5 = vcmask 1046534   ;;  %vm695_vm6 = vcmask 1047559   ;;  %s1175_s1 = smov [#allocation7]  }
  0x29   :  { %998 = vmatprep.subr.bf16.mxu0 %v1068_v1  ;;  %1045 = vmatprep.subr.bf16.mxu1 %v1068_v1  ;;  %v1071_v6 = vld [vmem:[#allocation5 + $0x20] sm:$0xff]   ;;  %v1074_v9 = vld [vmem:[#allocation5 + $0x38] sm:$0xff]   ;;  %v1077_v10 = vld [vmem:[#allocation2 + $0x8] sm:$0xff]   ;;  %s935_s6 = sshll.u32 %s1175_s1, 4  ;;  %s936_s6 = int_to_ptr.vmem [resolvable:$true] %s935_s6 }
  0x2a   :  { %1012 = vmatprep.mubr.bf16.mxu0 %v1075_v4  ;;  %1028 = vmatprep.mubr.bf16.mxu1 %v1076_v5  ;;  %v1078_v11 = vld [vmem:[#allocation2 + $0x48] sm:$0xff]   ;;  %v1079_v12 = vld [vmem:[#allocation2 + $0x10] sm:$0xff]   ;;  %v1081_v14 = vld [vmem:[#allocation2 + $0x18] sm:$0xff]   ;;  %s1143_s7 = scalar_lea.vmem %s936_s6, 512  ;;  %p1148_p3 = scmp.lt.s32.totalorder %s936_s6, %s936_s6 }
  0x2b   :  { %v1080_v13 = vld [vmem:[#allocation2 + $0x50] sm:$0xff]   ;;  %v1082_v15 = vld [vmem:[#allocation2 + $0x58] sm:$0xff]   ;;  %v1083_v16 = vld [vmem:[#allocation2 + $0x20] sm:$0xff]   ;;  %p1144_p2 = scmp.ne.s32.totalorder %s936_s6, %s1143_s7  ;;  %p1149_p4 = scmp.lt.s32.totalorder %s1143_s7, %s1143_s7 }
  0x2c   :  { %999 = vmatpush3.bf16.msra.mxu0 %v1068_v1  ;;  %1053 = vmatpush3.bf16.msra.mxu1 %v1068_v1  ;;  %v1084_v17 = vld [vmem:[#allocation2 + $0x60] sm:$0xff]   ;;  %v1085_v18 = vld [vmem:[#allocation2 + $0x28] sm:$0xff]   ;;  %v1087_v20 = vld [vmem:[#allocation2 + $0x30] sm:$0xff]  }
  0x2d   :  { %1000 = vmatprep.subr.bf16.mxu0 %v1069_v2  ;;  %1046 = vmatprep.subr.bf16.mxu1 %v1069_v2  ;;  %v1086_v19 = vld [vmem:[#allocation2 + $0x68] sm:$0xff]   ;;  %v1088_v21 = vld [vmem:[#allocation2 + $0x70] sm:$0xff]   ;;  %v1089_v22 = vld [vmem:[#allocation2 + $0x38] sm:$0xff]   ;;  %p1150_p5 = por %p1149_p4, %p1148_p3 }
  0x2e   :  { %v1090_v23 = vld [vmem:[#allocation2 + $0x78] sm:$0xff]  }
  0x2f   :  { %p1151_p6 = pnand %p1150_p5, %p1144_p2 }
  0x30   :  { %1001 = vmatpush3.bf16.msra.mxu0 %v1069_v2  ;;  %1054 = vmatpush3.bf16.msra.mxu1 %v1069_v2 }
  0x31   :  { %1002 = vmatprep.subr.bf16.mxu0 %v1070_v3  ;;  %1047 = vmatprep.subr.bf16.mxu1 %v1070_v3 }
  0x34   :  { %1003 = vmatpush3.bf16.msra.mxu0 %v1070_v3  ;;  %1055 = vmatpush3.bf16.msra.mxu1 %v1070_v3 }
  0x35   :  { %1004 = vmatprep.subr.bf16.mxu0 %v1071_v6  ;;  %1048 = vmatprep.subr.bf16.mxu1 %v1071_v6 }
  0x38   :  { %1005 = vmatpush3.bf16.msra.mxu0 %v1071_v6  ;;  %1056 = vmatpush3.bf16.msra.mxu1 %v1071_v6 }
  0x39   :  { %1006 = vmatprep.subr.bf16.mxu0 %v1072_v7  ;;  %1049 = vmatprep.subr.bf16.mxu1 %v1072_v7 }
  0x3c   :  { %1007 = vmatpush3.bf16.msra.mxu0 %v1072_v7  ;;  %1057 = vmatpush3.bf16.msra.mxu1 %v1072_v7 }
  0x3d   :  { %1008 = vmatprep.subr.bf16.mxu0 %v1073_v8  ;;  %1050 = vmatprep.subr.bf16.mxu1 %v1073_v8 }
  0x40   :  { %1009 = vmatpush3.bf16.msra.mxu0 %v1073_v8  ;;  %1058 = vmatpush3.bf16.msra.mxu1 %v1073_v8 }
  0x41   :  { %1010 = vmatprep.subr.bf16.mxu0 %v1074_v9  ;;  %1051 = vmatprep.subr.bf16.mxu1 %v1074_v9 }
  0x44   :  { %1011 = vmatpush3.bf16.msra.mxu0 %v1074_v9  ;;  %1059 = vmatpush3.bf16.msra.mxu1 %v1074_v9 }
  0x47   :  { %1013 = vmatmul.mubr.bf16.vlgmr.msra.gmra.mrb[0].mxu0 %v1077_v10  ;;  %1029 = vmatmul.mubr.bf16.vlgmr.msra.gmra.mrb[0].mxu1 %v1078_v11 }
  0x48   :  { %1016 = vmatprep.mubr.bf16.mxu0 %v1079_v12  ;;  %1032 = vmatprep.mubr.bf16.mxu1 %v1080_v13 }
  0x4f   :  { %1017 = vmatmul.mubr.bf16.gmra.mrb[4].mxu0 %v1081_v14  ;;  %1033 = vmatmul.mubr.bf16.gmra.mrb[4].mxu1 %v1082_v15 }
  0x50   :  { %1020 = vmatprep.mubr.bf16.mxu0 %v1083_v16  ;;  %1036 = vmatprep.mubr.bf16.mxu1 %v1084_v17 }
  0x57   :  { %1021 = vmatmul.mubr.bf16.gmra.mrb[8].mxu0 %v1085_v18  ;;  %1037 = vmatmul.mubr.bf16.gmra.mrb[8].mxu1 %v1086_v19 }
  0x58   :  { %1024 = vmatprep.mubr.bf16.mxu0 %v1087_v20  ;;  %1040 = vmatprep.mubr.bf16.mxu1 %v1088_v21 }
  0x5f   :  { %1025 = vmatmul.mubr.bf16.gmra.mrb[12].mxu0 %v1089_v22  ;;  %1041 = vmatmul.mubr.bf16.gmra.mrb[12].mxu1 %v1090_v23 }
 0x11a   :  { %v1014_v24 = vpop.f32.mrb[0].mxu0  ;;  %v1030_v25 = vpop.f32.mrb[0].mxu1 }
 0x11b   :  { %v406_v26 = vrot.slane %v1014_v24, 4  ;;  %v502_v27 = vrot.slane %v1030_v25, 4  ;;  %v267_v28 = vpop.f32.mrb[1].mxu0  ;;  %v331_v29 = vpop.f32.mrb[1].mxu1 }
 0x11c   :  { %v394_v30 = vrot.slane %v267_v28, 4  ;;  %v490_v31 = vrot.slane %v331_v29, 4  ;;  %v1015_v32 = vpop.f32.mrb[2].mxu0  ;;  %v1031_v33 = vpop.f32.mrb[2].mxu1 }
 0x11d   :  { %v407_v34 = vadd.f32 %v1014_v24, %v406_v26  ;;  %v503_v35 = vadd.f32 %v1030_v25, %v502_v27  ;;  %v412_v36 = vrot.slane %v1015_v32, 4  ;;  %v508_v37 = vrot.slane %v1031_v33, 4  ;;  %v270_v38 = vpop.f32.mrb[3].mxu0  ;;  %v334_v39 = vpop.f32.mrb[3].mxu1 }
 0x11e   :  { %v395_v40 = vadd.f32 %v394_v30, %v267_v28  ;;  %v491_v41 = vadd.f32 %v490_v31, %v331_v29  ;;  %v400_v42 = vrot.slane %v270_v38, 4  ;;  %v496_v43 = vrot.slane %v334_v39, 4 }
 0x11f   :  { %v408_v44 = vrot.slane %v407_v34, 2  ;;  %v504_v45 = vrot.slane %v503_v35, 2  ;;  %v413_v46 = vadd.f32 %v1015_v32, %v412_v36  ;;  %v509_v47 = vadd.f32 %v1031_v33, %v508_v37 }
 0x120   :  { %v396_v48 = vrot.slane %v395_v40, 2  ;;  %v492_v49 = vrot.slane %v491_v41, 2  ;;  %v401_v50 = vadd.f32 %v400_v42, %v270_v38  ;;  %v497_v51 = vadd.f32 %v496_v43, %v334_v39 }
 0x121   :  { %v409_v52 = vadd.f32 %v408_v44, %v407_v34  ;;  %v505_v53 = vadd.f32 %v504_v45, %v503_v35  ;;  %v414_v54 = vrot.slane %v413_v46, 2  ;;  %v510_v55 = vrot.slane %v509_v47, 2 }
 0x122   :  { %v397_v56 = vadd.f32 %v396_v48, %v395_v40  ;;  %v493_v57 = vadd.f32 %v492_v49, %v491_v41  ;;  %v402_v58 = vrot.slane %v401_v50, 2  ;;  %v498_v59 = vrot.slane %v497_v51, 2  ;;  %v1018_v60 = vpop.f32.mrb[4].mxu0  ;;  %v1034_v61 = vpop.f32.mrb[4].mxu1 }
 0x123   :  { %v410_v62 = vrot.slane %v409_v52, 1  ;;  %v506_v63 = vrot.slane %v505_v53, 1  ;;  %v415_v0 = vadd.f32 %v414_v54, %v413_v46  ;;  %v511_v1 = vadd.f32 %v510_v55, %v509_v47  ;;  %v283_v2 = vpop.f32.mrb[5].mxu0  ;;  %v347_v3 = vpop.f32.mrb[5].mxu1 }
 0x124   :  { %v398_v4 = vrot.slane %v397_v56, 1  ;;  %v494_v5 = vrot.slane %v493_v57, 1  ;;  %v403_v6 = vadd.f32 %v402_v58, %v401_v50  ;;  %v499_v7 = vadd.f32 %v498_v59, %v497_v51  ;;  %v1019_v8 = vpop.f32.mrb[6].mxu0  ;;  %v1035_v9 = vpop.f32.mrb[6].mxu1 }
 0x125   :  { %v411_v10 = vadd.f32 %v410_v62, %v409_v52  ;;  %v507_v11 = vadd.f32 %v506_v63, %v505_v53  ;;  %v416_v12 = vrot.slane %v415_v0, 1  ;;  %v512_v13 = vrot.slane %v511_v1, 1  ;;  %v286_v14 = vpop.f32.mrb[7].mxu0  ;;  %v350_v15 = vpop.f32.mrb[7].mxu1 }
 0x126   :  { %v399_v16 = vadd.f32 %v398_v4, %v397_v56  ;;  %v495_v17 = vadd.f32 %v494_v5, %v493_v57  ;;  %v404_v18 = vrot.slane %v403_v6, 1  ;;  %v500_v19 = vrot.slane %v499_v7, 1 }
 0x127   :  { %v1217_v20 = vmul.f32 0.125, %v411_v10  ;;  %v1219_v21 = vmul.f32 0.125, %v507_v11  ;;  %v417_v22 = vadd.f32 %v416_v12, %v415_v0  ;;  %v513_v23 = vadd.f32 %v512_v13, %v511_v1 }
 0x128   :  { %v1221_v24 = vmul.f32 0.125, %v399_v16  ;;  %v1223_v25 = vmul.f32 0.125, %v495_v17  ;;  %v405_v26 = vadd.f32 %v404_v18, %v403_v6  ;;  %v501_v27 = vadd.f32 %v500_v19, %v499_v7 }
 0x129   :  { %v1227_v28 = vmul.f32 %v1217_v20, %v1217_v20  ;;  %v1231_v29 = vmul.f32 %v1219_v21, %v1219_v21  ;;  %v1241_v34 = vmul.f32 0.125, %v417_v22  ;;  %v1243_v35 = vmul.f32 0.125, %v513_v23 }
 0x12a   :  { %v1233_v30 = vmul.f32 0.125, %v405_v26  ;;  %v1235_v31 = vmul.f32 0.125, %v501_v27  ;;  %v1237_v32 = vpop.f32.mrb[8].mxu0  ;;  %v1239_v33 = vpop.f32.mrb[8].mxu1  ;;  %v430_v36 = vrot.slane %v1018_v60, 4  ;;  %v526_v37 = vrot.slane %v1034_v61, 4 }
 0x12b   :  { %v1245_v38 = vpop.f32.mrb[9].mxu0  ;;  %v1247_v39 = vpop.f32.mrb[9].mxu1  ;;  %v619_v40 = vmul.f32 %v1221_v24, %v1221_v24  ;;  %v635_v41 = vmul.f32 %v1223_v25, %v1223_v25  ;;  %v418_v42 = vrot.slane %v283_v2, 4  ;;  %v514_v43 = vrot.slane %v347_v3, 4 }
 0x12c   :  { %v1253_v44 = vpop.f32.mrb[10].mxu0  ;;  %v1255_v45 = vpop.f32.mrb[10].mxu1  ;;  %v431_v46 = vadd.f32 %v1018_v60, %v430_v36  ;;  %v527_v47 = vadd.f32 %v1034_v61, %v526_v37  ;;  %v436_v48 = vrot.slane %v1019_v8, 4  ;;  %v532_v49 = vrot.slane %v1035_v9, 4 }
 0x12d   :  { %v1257_v50 = vpop.f32.mrb[11].mxu0  ;;  %v1259_v51 = vpop.f32.mrb[11].mxu1  ;;  %v620_v52 = vmul.f32 %v1233_v30, %v1233_v30  ;;  %v636_v53 = vmul.f32 %v1235_v31, %v1235_v31  ;;  %v419_v54 = vadd.f32 %v418_v42, %v283_v2  ;;  %v515_v55 = vadd.f32 %v514_v43, %v347_v3 }
 0x12e   :  { %v432_v56 = vrot.slane %v431_v46, 2  ;;  %v528_v57 = vrot.slane %v527_v47, 2  ;;  %v437_v58 = vadd.f32 %v1019_v8, %v436_v48  ;;  %v533_v59 = vadd.f32 %v1035_v9, %v532_v49 }
 0x12f   :  { %v420_v60 = vrot.slane %v419_v54, 2  ;;  %v516_v61 = vrot.slane %v515_v55, 2  ;;  %v424_v62 = vrot.slane %v286_v14, 4  ;;  %v520_v63 = vrot.slane %v350_v15, 4 }
 0x130   :  { %v433_v0 = vadd.f32 %v432_v56, %v431_v46  ;;  %v529_v1 = vadd.f32 %v528_v57, %v527_v47  ;;  %v438_v4 = vrot.slane %v437_v58, 2  ;;  %v534_v5 = vrot.slane %v533_v59, 2 }
 0x131   :  { %v421_v6 = vadd.f32 %v420_v60, %v419_v54  ;;  %v517_v7 = vadd.f32 %v516_v61, %v515_v55  ;;  %v425_v10 = vadd.f32 %v424_v62, %v286_v14  ;;  %v521_v11 = vadd.f32 %v520_v63, %v350_v15 }
 0x132   :  { %v1265_v12 = vpop.f32.mrb[12].mxu0  ;;  %v1267_v2 = vpop.f32.mrb[12].mxu1  ;;  %v434_v3 = vrot.slane %v433_v0, 1  ;;  %v530_v13 = vrot.slane %v529_v1, 1  ;;  %v439_v8 = vadd.f32 %v438_v4, %v437_v58  ;;  %v535_v9 = vadd.f32 %v534_v5, %v533_v59 }
 0x133   :  { %v1269_v16 = vpop.f32.mrb[13].mxu0  ;;  %v1271_v17 = vpop.f32.mrb[13].mxu1  ;;  %v422_v18 = vrot.slane %v421_v6, 1  ;;  %v518_v19 = vrot.slane %v517_v7, 1  ;;  %v426_v22 = vrot.slane %v425_v10, 2  ;;  %v522_v23 = vrot.slane %v521_v11, 2 }
 0x134   :  { %v1273_v26 = vpop.f32.mrb[14].mxu0  ;;  %v1275_v14 = vpop.f32.mrb[14].mxu1  ;;  %v1279_v15 = vmul.f32 %v1241_v34, %v1241_v34  ;;  %v1283_v27 = vmul.f32 %v1243_v35, %v1243_v35  ;;  %v435_v36 = vadd.f32 %v434_v3, %v433_v0  ;;  %v531_v37 = vadd.f32 %v530_v13, %v529_v1 }
 0x135   :  { %v1285_v42 = vpop.f32.mrb[15].mxu0  ;;  %v1287_v43 = vpop.f32.mrb[15].mxu1  ;;  %v440_v46 = vrot.slane %v439_v8, 1  ;;  %v536_v47 = vrot.slane %v535_v9, 1  ;;  %v427_v48 = vadd.f32 %v426_v22, %v425_v10  ;;  %v523_v49 = vadd.f32 %v522_v23, %v521_v11 }
 0x136   :  { %v1290_v54 = vsel %vm683_vm0, %v620_v52, %v619_v40  ;;  %v1293_v55 = vsel %vm683_vm0, %v636_v53, %v635_v41  ;;  %v423_v56 = vadd.f32 %v422_v18, %v421_v6  ;;  %v519_v57 = vadd.f32 %v518_v19, %v517_v7 }
 0x137   :  { %v1295_v58 = vmul.f32 0.125, %v435_v36  ;;  %v1297_v59 = vmul.f32 0.125, %v531_v37  ;;  %v428_v60 = vrot.slane %v427_v48, 1  ;;  %v524_v61 = vrot.slane %v523_v49, 1 }
 0x138   :  { %v454_v62 = vrot.slane %v1237_v32, 4  ;;  %v550_v63 = vrot.slane %v1239_v33, 4  ;;  %v442_v0 = vrot.slane %v1245_v38, 4  ;;  %v538_v40 = vrot.slane %v1247_v39, 4 }
 0x139   :  { %v1303_v52 = vadd.f32 %v440_v46, %v439_v8  ;;  %v1305_v41 = vadd.f32 %v536_v47, %v535_v9  ;;  %v429_v53 = vadd.f32 %v428_v60, %v427_v48  ;;  %v525_v1 = vadd.f32 %v524_v61, %v523_v49 }
 0x13a   :  { %v455_v4 = vadd.f32 %v1237_v32, %v454_v62  ;;  %v551_v5 = vadd.f32 %v1239_v33, %v550_v63  ;;  %v443_v6 = vadd.f32 %v442_v0, %v1245_v38  ;;  %v539_v7 = vadd.f32 %v538_v40, %v1247_v39 }
 0x13b   :  { %v1311_v10 = vmul.f32 0.125, %v423_v56  ;;  %v1313_v11 = vmul.f32 0.125, %v519_v57  ;;  %v460_v3 = vrot.slane %v1253_v44, 4  ;;  %v556_v13 = vrot.slane %v1255_v45, 4 }
 0x13c   :  { %v456_v8 = vrot.slane %v455_v4, 2  ;;  %v552_v9 = vrot.slane %v551_v5, 2  ;;  %v444_v18 = vrot.slane %v443_v6, 2  ;;  %v540_v19 = vrot.slane %v539_v7, 2 }
 0x13d   :  { %v1317_v22 = vmul.f32 0.125, %v429_v53  ;;  %v1319_v32 = vmul.f32 0.125, %v525_v1  ;;  %v461_v33 = vadd.f32 %v1253_v44, %v460_v3  ;;  %v557_v38 = vadd.f32 %v1255_v45, %v556_v13 }
 0x13e   :  { %v457_v39 = vadd.f32 %v456_v8, %v455_v4  ;;  %v553_v23 = vadd.f32 %v552_v9, %v551_v5  ;;  %v445_v36 = vadd.f32 %v444_v18, %v443_v6  ;;  %v541_v37 = vadd.f32 %v540_v19, %v539_v7 }
 0x13f   :  { %v462_v46 = vrot.slane %v461_v33, 2  ;;  %v558_v47 = vrot.slane %v557_v38, 2  ;;  %v448_v48 = vrot.slane %v1257_v50, 4  ;;  %v544_v49 = vrot.slane %v1259_v51, 4 }
 0x140   :  { %v458_v56 = vrot.slane %v457_v39, 1  ;;  %v554_v57 = vrot.slane %v553_v23, 1  ;;  %v446_v60 = vrot.slane %v445_v36, 1  ;;  %v542_v61 = vrot.slane %v541_v37, 1 }
 0x141   :  { %v463_v62 = vadd.f32 %v462_v46, %v461_v33  ;;  %v559_v63 = vadd.f32 %v558_v47, %v557_v38  ;;  %v449_v44 = vadd.f32 %v448_v48, %v1257_v50  ;;  %v545_v45 = vadd.f32 %v544_v49, %v1259_v51 }
 0x142   :  { %v459_v0 = vadd.f32 %v458_v56, %v457_v39  ;;  %v555_v40 = vadd.f32 %v554_v57, %v553_v23  ;;  %v447_v53 = vadd.f32 %v446_v60, %v445_v36  ;;  %v543_v1 = vadd.f32 %v542_v61, %v541_v37 }
 0x143   :  { %v464_v4 = vrot.slane %v463_v62, 1  ;;  %v560_v5 = vrot.slane %v559_v63, 1  ;;  %v450_v6 = vrot.slane %v449_v44, 2  ;;  %v546_v7 = vrot.slane %v545_v45, 2 }
 0x144   :  { %v1329_v3 = vmul.f32 %v1311_v10, %v1311_v10  ;;  %v1333_v13 = vmul.f32 %v1313_v11, %v1313_v11  ;;  %v1335_v8 = vmul.f32 0.125, %v459_v0  ;;  %v1337_v50 = vmul.f32 0.125, %v555_v40 }
 0x145   :  { %v1339_v51 = vmul.f32 0.125, %v447_v53  ;;  %v1341_v9 = vmul.f32 0.125, %v543_v1  ;;  %v451_v18 = vadd.f32 %v450_v6, %v449_v44  ;;  %v547_v19 = vadd.f32 %v546_v7, %v545_v45 }
 0x146   :  { %1577 = vst [vmem:[#allocation11_spill] sm:$0xff] %v1337_v50  ;;  %v1345_v33 = vmul.f32 %v1317_v22, %v1317_v22  ;;  %v1349_v38 = vmul.f32 %v1319_v32, %v1319_v32  ;;  %v465_v39 = vadd.f32 %v464_v4, %v463_v62  ;;  %v561_v23 = vadd.f32 %v560_v5, %v559_v63 }
 0x147   :  { %v1353_v36 = vmul.f32 %v1335_v8, %v1335_v8  ;;  %v1357_v37 = vmul.f32 %v1337_v50, %v1337_v50  ;;  %v452_v46 = vrot.slane %v451_v18, 1  ;;  %v548_v47 = vrot.slane %v547_v19, 1 }
 0x148   :  { %v478_v48 = vrot.slane %v1265_v12, 4  ;;  %v574_v49 = vrot.slane %v1267_v2, 4  ;;  %v466_v56 = vrot.slane %v1269_v16, 4  ;;  %v562_v57 = vrot.slane %v1271_v17, 4 }
 0x149   :  { %v627_v60 = vmul.f32 %v1339_v51, %v1339_v51  ;;  %v643_v61 = vmul.f32 %v1341_v9, %v1341_v9  ;;  %v453_v62 = vadd.f32 %v452_v46, %v451_v18  ;;  %v549_v63 = vadd.f32 %v548_v47, %v547_v19 }
 0x14a   :  { %v479_v44 = vadd.f32 %v1265_v12, %v478_v48  ;;  %v575_v45 = vadd.f32 %v1267_v2, %v574_v49  ;;  %v467_v0 = vadd.f32 %v466_v56, %v1269_v16  ;;  %v563_v40 = vadd.f32 %v562_v57, %v1271_v17 }
 0x14b   :  { %v1371_v53 = vmul.f32 0.125, %v453_v62  ;;  %v1373_v1 = vmul.f32 0.125, %v549_v63  ;;  %v484_v4 = vrot.slane %v1273_v26, 4  ;;  %v580_v5 = vrot.slane %v1275_v14, 4 }
 0x14c   :  { %v480_v6 = vrot.slane %v479_v44, 2  ;;  %v576_v7 = vrot.slane %v575_v45, 2  ;;  %v468_v18 = vrot.slane %v467_v0, 2  ;;  %v564_v19 = vrot.slane %v563_v40, 2 }
 0x14d   :  { %1578 = vst [vmem:[#allocation12_spill] sm:$0xff] %v1373_v1  ;;  %v1377_v46 = vmul.f32 0.125, %v465_v39  ;;  %v1379_v12 = vmul.f32 0.125, %v561_v23  ;;  %v485_v2 = vadd.f32 %v1273_v26, %v484_v4  ;;  %v581_v16 = vadd.f32 %v1275_v14, %v580_v5 }
 0x14e   :  { %v481_v17 = vadd.f32 %v480_v6, %v479_v44  ;;  %v577_v47 = vadd.f32 %v576_v7, %v575_v45  ;;  %v469_v48 = vadd.f32 %v468_v18, %v467_v0  ;;  %v565_v49 = vadd.f32 %v564_v19, %v563_v40 }
 0x14f   :  { %v628_v56 = vmul.f32 %v1371_v53, %v1371_v53  ;;  %v644_v57 = vmul.f32 %v1373_v1, %v1373_v1  ;;  %v486_v39 = vrot.slane %v485_v2, 2  ;;  %v582_v62 = vrot.slane %v581_v16, 2 }
 0x150   :  { %v482_v23 = vrot.slane %v481_v17, 1  ;;  %v578_v63 = vrot.slane %v577_v47, 1  ;;  %v470_v26 = vrot.slane %v469_v48, 1  ;;  %v566_v4 = vrot.slane %v565_v49, 1 }
 0x151   :  { %v487_v14 = vadd.f32 %v486_v39, %v485_v2  ;;  %v583_v44 = vadd.f32 %v582_v62, %v581_v16  ;;  %v472_v45 = vrot.slane %v1285_v42, 4  ;;  %v568_v0 = vrot.slane %v1287_v43, 4 }
 0x152   :  { %v483_v40 = vadd.f32 %v482_v23, %v481_v17  ;;  %v579_v5 = vadd.f32 %v578_v63, %v577_v47  ;;  %v471_v6 = vadd.f32 %v470_v26, %v469_v48  ;;  %v567_v7 = vadd.f32 %v566_v4, %v565_v49 }
 0x153   :  { %v488_v18 = vrot.slane %v487_v14, 1  ;;  %v584_v19 = vrot.slane %v583_v44, 1  ;;  %v473_v50 = vadd.f32 %v472_v45, %v1285_v42  ;;  %v569_v1 = vadd.f32 %v568_v0, %v1287_v43 }
 0x154   :  { %v646_v2 = vmul.f32 %v1379_v12, %v1379_v12  ;;  %v697_v16 = vsel %vm683_vm0, %v628_v56, %v627_v60  ;;  %v1394_v39 = vmul.f32 0.125, %v471_v6  ;;  %v1396_v62 = vmul.f32 0.125, %v567_v7 }
 0x155   :  { %v711_v17 = vsel %vm683_vm0, %v644_v57, %v643_v61  ;;  %v585_v47 = vadd.f32 %v584_v19, %v583_v44  ;;  %v474_v48 = vrot.slane %v473_v50, 2  ;;  %v570_v49 = vrot.slane %v569_v1, 2 }
 0x156   :  { %v1399_v23 = vmul.f32 0.125, %v483_v40  ;;  %v1401_v63 = vmul.f32 0.125, %v579_v5  ;;  %v489_v42 = vadd.f32 %v488_v18, %v487_v14  ;;  %v1404_v43 = vmul.f32 0.125, %v1305_v41 }
 0x157   :  { %v631_v60 = vmul.f32 %v1394_v39, %v1394_v39  ;;  %v647_v56 = vmul.f32 %v1396_v62, %v1396_v62  ;;  %v475_v26 = vadd.f32 %v474_v48, %v473_v50  ;;  %v571_v4 = vadd.f32 %v570_v49, %v569_v1 }
 0x158   :  { %v1410_v61 = vmul.f32 0.125, %v585_v47  ;;  %v641_v57 = vmul.f32 %v1297_v59, %v1297_v59  ;;  %v705_v14 = vsel %vm685_vm1, %v1231_v29, %v1293_v55  ;;  %v1418_v41 = vmul.f32 0.125, %v1303_v52 }
 0x159   :  { %v476_v44 = vrot.slane %v475_v26, 1  ;;  %v572_v45 = vrot.slane %v571_v4, 1  ;;  %v706_v0 = vsel %vm687_vm2, %v1283_v27, %v705_v14  ;;  %v686_v50 = vsel %vm685_vm1, %v1227_v28, %v1290_v54 }
 0x15a   :  { %v642_v1 = vmul.f32 %v1404_v43, %v1404_v43  ;;  %v707_v40 = vsel %vm689_vm3, %v1333_v13, %v706_v0  ;;  %v625_v29 = vmul.f32 %v1295_v58, %v1295_v58  ;;  %v688_v55 = vsel %vm687_vm2, %v1279_v15, %v686_v50 }
 0x15b   :  { %v477_v52 = vadd.f32 %v476_v44, %v475_v26  ;;  %v573_v5 = vadd.f32 %v572_v45, %v571_v4  ;;  %v708_v27 = vsel %vm691_vm4, %v1349_v38, %v707_v40  ;;  %v690_v28 = vsel %vm689_vm3, %v1329_v3, %v688_v55 }
 0x15c   :  { %v709_v54 = vsel %vm693_vm5, %v641_v57, %v708_v27  ;;  %v626_v6 = vmul.f32 %v1418_v41, %v1418_v41  ;;  %v692_v13 = vsel %vm691_vm4, %v1345_v33, %v690_v28  ;;  %v712_v7 = vsel %vm685_vm1, %v1357_v37, %v711_v17 }
 0x15d   :  { %v1444_v15 = vmul.f32 0.125, %v477_v52  ;;  %v1446_v18 = vmul.f32 0.125, %v573_v5  ;;  %v710_v38 = vsel %vm695_vm6, %v642_v1, %v709_v54  ;;  %v694_v19 = vsel %vm693_vm5, %v625_v29, %v692_v13 }
 0x15e   :  { %v630_v3 = vmul.f32 %v1377_v46, %v1377_v46  ;;  %v1452_v47 = vmul.f32 0.125, %v489_v42  ;;  %726 = vadd.xlane.f32.xlu1 %v710_v38  ;;  %v696_v48 = vsel %vm695_vm6, %v626_v6, %v694_v19  ;;  %v713_v33 = vsel %vm687_vm2, %v646_v2, %v712_v7 }
 0x15f   :  { %v632_v37 = vmul.f32 %v1444_v15, %v1444_v15  ;;  %v648_v17 = vmul.f32 %v1446_v18, %v1446_v18  ;;  %722 = vadd.xlane.f32.xlu0 %v696_v48  ;;  %v714_v49 = vsel %vm689_vm3, %v647_v56, %v713_v33  ;;  %v698_v26 = vsel %vm685_vm1, %v1353_v36, %v697_v16 }
 0x160   :  { %v649_v42 = vmul.f32 %v1401_v63, %v1401_v63  ;;  %v699_v4 = vsel %vm687_vm2, %v630_v3, %v698_v26  ;;  %v650_v2 = vmul.f32 %v1410_v61, %v1410_v61  ;;  %v633_v14 = vmul.f32 %v1399_v23, %v1399_v23 }
 0x161   :  { %v715_v57 = vsel %vm691_vm4, %v648_v17, %v714_v49  ;;  %v700_v44 = vsel %vm689_vm3, %v631_v60, %v699_v4  ;;  %v634_v36 = vmul.f32 %v1452_v47, %v1452_v47 }
 0x162   :  { %v716_v56 = vsel %vm693_vm5, %v649_v42, %v715_v57  ;;  %v701_v16 = vsel %vm691_vm4, %v632_v37, %v700_v44 }
 0x163   :  { %v717_v45 = vsel %vm695_vm6, %v650_v2, %v716_v56  ;;  %v702_v0 = vsel %vm693_vm5, %v633_v14, %v701_v16 }
 0x164   :  { %728 = vadd.xlane.f32.xlu1 %v717_v45  ;;  %v703_v50 = vsel %vm695_vm6, %v634_v36, %v702_v0 }
 0x165   :  { %724 = vadd.xlane.f32.xlu0 %v703_v50 }
 0x1eb   :  { %v727_v1 = vpop.xlane.xlu1 %726 }
 0x1ec   :  { %v732_v40 = vadd.f32 1e-06, %v727_v1  ;;  %v723_v29 = vpop.xlane.xlu0 %722 }
 0x1ed   :  { %v730_v55 = vadd.f32 1e-06, %v723_v29 }
 0x1ee   :  { %1091 = vrsqrt.f32 %v732_v40 }
 0x1ef   :  { %1093 = vrsqrt.f32 %v730_v55 }
 0x1f1   :  { %v729_v60 = vpop.xlane.xlu1 %728 }
 0x1f2   :  { %v733_v52 = vadd.f32 1e-06, %v729_v60  ;;  %v725_v5 = vpop.xlane.xlu0 %724 }
 0x1f3   :  { %v731_v27 = vadd.f32 1e-06, %v725_v5 }
 0x1f4   :  { %1095 = vrsqrt.f32 %v733_v52 }
 0x1f5   :  { %1097 = vrsqrt.f32 %v731_v27 }
 0x1f8   :  { %v1092_v28 = vpop.eup %1091 }
 0x1f9   :  { %v1094_v54 = vpop.eup %1093  ;;  %v756_v6 = vrot.slane %v1092_v28, 1  ;;  %v757_v37 = vrot.slane %v1092_v28, 2  ;;  %v758_v17 = vrot.slane %v1092_v28, 3  ;;  %v759_v49 = vrot.slane %v1092_v28, 4 }
 0x1fa   :  { %v742_v13 = vrot.slane %v1094_v54, 1  ;;  %v743_v7 = vrot.slane %v1094_v54, 2  ;;  %v744_v38 = vrot.slane %v1094_v54, 3  ;;  %v745_v19 = vrot.slane %v1094_v54, 4 }
 0x1fb   :  { %v746_v3 = vrot.slane %v1094_v54, 5  ;;  %v747_v48 = vrot.slane %v1094_v54, 6  ;;  %v748_v33 = vrot.slane %v1094_v54, 7  ;;  %v760_v26 = vrot.slane %v1092_v28, 5 }
 0x1fc   :  { %v761_v42 = vrot.slane %v1092_v28, 6  ;;  %v762_v4 = vrot.slane %v1092_v28, 7  ;;  %v802_v2 = vmul.f32 %v1094_v54, %v1221_v24  ;;  %v803_v57 = vmul.f32 %v742_v13, %v1233_v30 }
 0x1fd   :  { %v804_v14 = vmul.f32 %v743_v7, %v1217_v20  ;;  %v805_v56 = vmul.f32 %v744_v38, %v1241_v34  ;;  %v806_v36 = vmul.f32 %v745_v19, %v1311_v10  ;;  %v1487_v16 = vmul.f32 %v746_v3, %v1317_v22 }
 0x1fe   :  { %v1482_v44 = vpop.eup %1095  ;;  %v1490_v45 = vmul.f32 %v747_v48, %v1295_v58  ;;  %v1494_v24 = vmul.f32 %v748_v33, %v1418_v41  ;;  %v818_v20 = vmul.f32 %v1092_v28, %v1223_v25  ;;  %v819_v30 = vmul.f32 %v756_v6, %v1235_v31 }
 0x1ff   :  { %v1098_v0 = vpop.eup %1097  ;;  %v763_v50 = vrot.slane %v1482_v44, 1  ;;  %v764_v58 = vrot.slane %v1482_v44, 2  ;;  %v765_v60 = vrot.slane %v1482_v44, 3  ;;  %v766_v52 = vrot.slane %v1482_v44, 4 }
 0x200   :  { %v749_v1 = vrot.slane %v1098_v0, 1  ;;  %v750_v34 = vrot.slane %v1098_v0, 2  ;;  %v751_v40 = vrot.slane %v1098_v0, 3  ;;  %v752_v10 = vrot.slane %v1098_v0, 4 }
 0x201   :  { %v753_v29 = vrot.slane %v1098_v0, 5  ;;  %v754_v22 = vrot.slane %v1098_v0, 6  ;;  %v755_v55 = vrot.slane %v1098_v0, 7  ;;  %v767_v41 = vrot.slane %v1482_v44, 5 }
 0x202   :  { %v768_v5 = vrot.slane %v1482_v44, 6  ;;  %v769_v25 = vrot.slane %v1482_v44, 7  ;;  %v810_v31 = vmul.f32 %v1098_v0, %v1339_v51  ;;  %v811_v27 = vmul.f32 %v749_v1, %v1371_v53 }
 0x203   :  { %v812_v28 = vmul.f32 %v750_v34, %v1335_v8  ;;  %v813_v54 = vmul.f32 %v751_v40, %v1377_v46  ;;  %v814_v6 = vmul.f32 %v752_v10, %v1394_v39  ;;  %v815_v13 = vmul.f32 %v753_v29, %v1444_v15  ;;  %v1579_v15 = vld [vmem:[#allocation12_spill] sm:$0xff] }
 0x204   :  { %v816_v7 = vmul.f32 %v754_v22, %v1399_v23  ;;  %v817_v38 = vmul.f32 %v755_v55, %v1452_v47  ;;  %v820_v19 = vmul.f32 %v757_v37, %v1219_v21  ;;  %v821_v3 = vmul.f32 %v758_v17, %v1243_v35  ;;  %v1580_v23 = vld [vmem:[#allocation11_spill] sm:$0xff] }
 0x205   :  { %v822_v51 = vmul.f32 %v759_v49, %v1313_v11  ;;  %v823_v53 = vmul.f32 %v760_v26, %v1319_v32  ;;  %v824_v8 = vmul.f32 %v761_v42, %v1297_v59  ;;  %v825_v46 = vmul.f32 %v762_v4, %v1404_v43 }
 0x206   :  { %v826_v39 = vmul.f32 %v1482_v44, %v1341_v9  ;;  %v827_v48 = vmul.f32 %v763_v50, %v1579_v15  ;;  %v828_v33 = vmul.f32 %v764_v58, %v1580_v23  ;;  %v829_v47 = vmul.f32 %v765_v60, %v1379_v12 }
 0x207   :  { %v830_v21 = vmul.f32 %v766_v52, %v1396_v62  ;;  %v831_v35 = vmul.f32 %v767_v41, %v1446_v18  ;;  %v866_v11 = vrot.slane %v803_v57, 7  ;;  %v868_v37 = vrot.slane %v804_v14, 6 }
 0x208   :  { %v870_v32 = vrot.slane %v805_v56, 5  ;;  %v872_v17 = vrot.slane %v806_v36, 4  ;;  %v874_v59 = vrot.slane %v1487_v16, 3  ;;  %v876_v43 = vrot.slane %v1490_v45, 2 }
 0x209   :  { %v880_v49 = vrot.slane %v811_v27, 7  ;;  %v867_v9 = vsel %vm683_vm0, %v866_v11, %v802_v2  ;;  %v878_v26 = vrot.slane %v1494_v24, 1  ;;  %v882_v42 = vrot.slane %v812_v28, 6 }
 0x20a   :  { %v884_v4 = vrot.slane %v813_v54, 5  ;;  %v869_v12 = vsel %vm685_vm1, %v868_v37, %v867_v9  ;;  %v886_v18 = vrot.slane %v814_v6, 4  ;;  %v888_v57 = vrot.slane %v815_v13, 3 }
 0x20b   :  { %v881_v62 = vsel %vm683_vm0, %v880_v49, %v810_v31  ;;  %v871_v14 = vsel %vm687_vm2, %v870_v32, %v869_v12  ;;  %v890_v36 = vrot.slane %v816_v7, 2  ;;  %v894_v16 = vrot.slane %v819_v30, 7 }
 0x20c   :  { %v883_v56 = vsel %vm685_vm1, %v882_v42, %v881_v62  ;;  %v873_v45 = vsel %vm689_vm3, %v872_v17, %v871_v14  ;;  %v892_v0 = vrot.slane %v817_v38, 1  ;;  %v896_v50 = vrot.slane %v820_v19, 6 }
 0x20d   :  { %v885_v2 = vsel %vm687_vm2, %v884_v4, %v883_v56  ;;  %v875_v24 = vsel %vm691_vm4, %v874_v59, %v873_v45  ;;  %v895_v34 = vsel %vm683_vm0, %v894_v16, %v818_v20  ;;  %v898_v40 = vrot.slane %v821_v3, 5 }
 0x20e   :  { %v887_v1 = vsel %vm689_vm3, %v886_v18, %v885_v2  ;;  %v877_v10 = vsel %vm693_vm5, %v876_v43, %v875_v24  ;;  %v897_v22 = vsel %vm685_vm1, %v896_v50, %v895_v34  ;;  %v900_v30 = vrot.slane %v822_v51, 4 }
 0x20f   :  { %v889_v29 = vsel %vm691_vm4, %v888_v57, %v887_v1  ;;  %v879_v55 = vsel %vm695_vm6, %v878_v26, %v877_v10  ;;  %v899_v60 = vsel %vm687_vm2, %v898_v40, %v897_v22  ;;  %v902_v52 = vrot.slane %v823_v53, 3 }
 0x210   :  { %v891_v58 = vsel %vm693_vm5, %v890_v36, %v889_v29  ;;  %v901_v31 = vsel %vm689_vm3, %v900_v30, %v899_v60  ;;  %v904_v20 = vrot.slane %v824_v8, 2  ;;  %v908_v27 = vrot.slane %v827_v48, 7  ;;  %926 = vst [vmem:[#allocation7] sm:$0xff] %v879_v55 }
 0x211   :  { %v893_v41 = vsel %vm695_vm6, %v892_v0, %v891_v58  ;;  %v832_v28 = vmul.f32 %v768_v5, %v1401_v63  ;;  %v903_v54 = vsel %vm691_vm4, %v902_v52, %v901_v31  ;;  %v906_v6 = vrot.slane %v825_v46, 1 }
 0x212   :  { %v910_v13 = vrot.slane %v828_v33, 6  ;;  %927 = vst [vmem:[#allocation7 + $0x8] sm:$0xff] %v893_v41  ;;  %v833_v7 = vmul.f32 %v769_v25, %v1410_v61  ;;  %v905_v38 = vsel %vm693_vm5, %v904_v20, %v903_v54  ;;  %v909_v19 = vsel %vm683_vm0, %v908_v27, %v826_v39 }
 0x213   :  { %v912_v3 = vrot.slane %v829_v47, 5  ;;  %v907_v51 = vsel %vm695_vm6, %v906_v6, %v905_v38  ;;  %v914_v8 = vrot.slane %v830_v21, 4  ;;  %v916_v5 = vrot.slane %v831_v35, 3 }
 0x214   :  { %v911_v53 = vsel %vm685_vm1, %v910_v13, %v909_v19  ;;  %928 = vst [vmem:[#allocation7 + $0x10] sm:$0xff] %v907_v51  ;;  %v918_v44 = vrot.slane %v832_v28, 2  ;;  %v920_v25 = vrot.slane %v833_v7, 1 }
 0x215   :  { %v913_v63 = vsel %vm687_vm2, %v912_v3, %v911_v53 }
 0x216   :  { %v915_v46 = vsel %vm689_vm3, %v914_v8, %v913_v63 }
 0x217   :  { %v917_v61 = vsel %vm691_vm4, %v916_v5, %v915_v46 }
 0x218   :  { %v919_v39 = vsel %vm693_vm5, %v918_v44, %v917_v61 }
 0x219   :  { %v921_v15 = vsel %vm695_vm6, %v920_v25, %v919_v39 }
 0x21a   :  { %929 = vst [vmem:[#allocation7 + $0x18] sm:$0xff] %v921_v15 }
 0x21b   :  { %1154 = shalt.err (!%p1151_p6)
}
 0x21c   :  { %s1155_s10 = scalar_lea.hbm %s1574_s2, 512 }
 0x21d   :  { %p1156_p7 = scmp.ne.s32.totalorder %s1574_s2, %s1155_s10  ;;  %p1159_p8 = scmp.lt.u32.totalorder %s1155_s10, %s1574_s2 }
 0x21f   :  { %p1161_p9 = pnand %p1159_p8, %p1156_p7 }
 0x221   :  { %1164 = shalt.err (!%p1161_p9)
}
 0x222   :  { %s1176_s15 = smov 128   ;;  %s1177_s16 = smov 8  }
 0x223   :  { %941 = dma.vmem_to_hbm [thread:$0]  %s936_s6, 512, %s1574_s2, [#allocation4], %s1176_s15, %s1176_s15, %s1177_s16  }
 0x224   :  { %1169 = dma.done.wait [#allocation4], 512  }
 0x225   :  { %1170 = vsyncadd [#allocation4], 4294966784 }
 0x226   :  { %945 = vsyncpa [#allocation3], 1 }
 0x227   :  { %946 = vsyncpa [#allocation6], 1 }
 0x228   :  { %947 = vsyncpa [#allocation4], 1 }

</bundles_post_ra>
